<compile_context>
chip_gen: v7x
topology: tpu7x:2x2x1
jax: 0.10.0
libtpu: 0.0.40
codegen_flags: <defaults>
</compile_context>

<pallas_src>
import functools

import numpy as np
import jax
import jax.numpy as jnp
from jax.experimental import pallas as pl
from jax.experimental.pallas import tpu as pltpu


# ----------------------------------------------------------------------------
# Python-side code generation (identical semantics to the PyTorch helpers).
# ----------------------------------------------------------------------------
def create_position_code_sep(seq_graph, sep_token="stop_entity"):
    generating_entities = True
    relation_step = 0
    codes = []
    for node in seq_graph:
        if generating_entities:
            codes.append(4)
        else:
            if relation_step % 3 == 0:
                codes.append(1)
            elif relation_step % 3 == 1:
                codes.append(2)
            else:
                codes.append(3)
            relation_step += 1
        if node == sep_token:
            generating_entities = False
    codes = [0] + codes
    return codes


def get_codes(graph, pad_to=None):
    """Equivalent of PosEmbCodeSep.get_codes (pad_sequence, batch_first, pad=0)."""
    per_seq = [create_position_code_sep(g) for g in graph]
    max_len = max(len(c) for c in per_seq)
    if pad_to is not None:
        max_len = max(max_len, pad_to)
    out = np.zeros((len(per_seq), max_len), dtype=np.int32)
    for i, c in enumerate(per_seq):
        out[i, : len(c)] = np.asarray(c, dtype=np.int32)
    return jnp.asarray(out)


# ----------------------------------------------------------------------------
# Kernels.  codes_ref: (TB, TS, 1) int32, x_ref/o_ref: (TB, TS, D),
# table_ref: (5, D).  Structural lookup over the 5-row table = select chain.
# NOTE: codes are assumed to lie in {0..4} (as produced by get_codes); any
# other value maps to row 0 (matches padding_idx behaviour for padding).
# ----------------------------------------------------------------------------
def _structural_lookup(codes, table_ref):
    emb = jnp.where(codes == 1, table_ref[1:2, :], table_ref[0:1, :])
    for k in range(2, 5):
        emb = jnp.where(codes == k, table_ref[k:k + 1, :], emb)
    return emb  # (TB, TS, D)


def _kernel_abs_resident(codes_ref, x_ref, table_ref, abs_ref, o_ref, *,
                         seq_axis, ts):
    # abs_ref holds the *whole* (S_pad, D) absolute table (constant block
    # index -> DMA'd once); slice the rows for this seq tile in VMEM.
    codes = codes_ref[...]
    x = x_ref[...]
    emb = _structural_lookup(codes, table_ref)
    row0 = pl.multiple_of(pl.program_id(seq_axis) * ts, ts)
    abs_tile = abs_ref[pl.ds(row0, ts), :]            # (TS, D)
    o_ref[...] = x + emb + abs_tile[None, :, :]


def _kernel_abs_streamed(codes_ref, x_ref, table_ref, abs_ref, o_ref):
    # abs_ref is the (TS, D) tile for the current seq block; batch is the
    # inner grid axis so this tile stays resident across batch steps.
    codes = codes_ref[...]
    x = x_ref[...]
    emb = _structural_lookup(codes, table_ref)
    o_ref[...] = x + emb + abs_ref[...][None, :, :]


def _kernel_noabs(codes_ref, x_ref, table_ref, o_ref):
    codes = codes_ref[...]
    x = x_ref[...]
    o_ref[...] = x + _structural_lookup(codes, table_ref)


# ----------------------------------------------------------------------------
# Tiling / VMEM planning
# ----------------------------------------------------------------------------
def _vmem_plan():
    """(working-set budget, scoped vmem limit) — generation aware."""
    try:
        cap = int(pltpu.get_tpu_info().vmem_capacity_bytes)
    except Exception:
        cap = 64 << 20  # conservative (v7x-sized) default
    budget = max(8 << 20, min(int(cap * 0.45), 56 << 20))
    limit = min(budget + (8 << 20), int(cap * 0.75))
    return budget, limit


def _round_up(n, m):
    return -(-n // m) * m


def _choose_tiles(B, S, D, itemsize, n_slabs, budget, fixed_bytes=0):
    """Pick (TB, TS, S_pad) so that `n_slabs` double-buffered (TB*TS, D) slabs
    plus `fixed_bytes` of resident data fit inside `budget`."""
    row_bytes = D * itemsize
    max_rows = max(8, (budget - fixed_bytes) // (n_slabs * row_bytes))
    s8 = _round_up(S, 8)
    if s8 <= max_rows:
        ts = s8
    else:
        ts = 8
        while ts * 2 <= max_rows and ts * 2 <= s8:
            ts *= 2
    s_pad = _round_up(S, ts)
    tb = 1
    for d in range(min(B, max(1, max_rows // ts)), 0, -1):
        if B % d == 0:
            tb = d
            break
    return tb, ts, s_pad


# ----------------------------------------------------------------------------
# Wrapper
# ----------------------------------------------------------------------------
def pos_emb_code_sep(x, codes, structural_table, absolute_emb=None,
                     add_absolute_emb=True, donate_x=False):
    """x: (B, S, D); codes: (B, >=S) int; table: (5, D); abs: (max_len>=S, D)."""
    B, S, D = x.shape
    assert structural_table.shape == (5, D)
    assert codes.shape[0] == B and codes.shape[1] >= S, "codes must cover seq_len"
    if add_absolute_emb:
        assert absolute_emb is not None, "absolute_emb required when add_absolute_emb"
        assert absolute_emb.shape[0] >= S and absolute_emb.shape[1] == D

    itemsize = jnp.dtype(x.dtype).itemsize
    budget, vmem_limit = _vmem_plan()

    # --- lane-dense output: pad D up to a multiple of 128 (no-op when aligned)
    D_pad = _round_up(D, 128)

    # --- decide abs handling + tile sizes ------------------------------------
    abs_bytes_est = _round_up(S, 8) * D_pad * itemsize
    if add_absolute_emb:
        abs_resident = abs_bytes_est <= budget // 3
        if abs_resident:
            TB, TS, S_pad = _choose_tiles(B, S, D_pad, itemsize,
                                          n_slabs=4, budget=budget,
                                          fixed_bytes=abs_bytes_est)
        else:
            TB, TS, S_pad = _choose_tiles(B, S, D_pad, itemsize,
                                          n_slabs=6, budget=budget)
    else:
        abs_resident = False
        TB, TS, S_pad = _choose_tiles(B, S, D_pad, itemsize,
                                      n_slabs=4, budget=budget)

    n_b, n_s = B // TB, S_pad // TS

    # --- pad / prepare operands ----------------------------------------------
    if S_pad != S or D_pad != D:
        x = jnp.pad(x, ((0, 0), (0, S_pad - S), (0, D_pad - D)))
    codes_s = codes[:, :S].astype(jnp.int32)
    if S_pad != S:
        codes_s = jnp.pad(codes_s, ((0, 0), (0, S_pad - S)))
    codes_s = codes_s.reshape(B, S_pad, 1)
    table = structural_table.astype(x.dtype)
    if D_pad != D:
        table = jnp.pad(table, ((0, 0), (0, D_pad - D)))

    # --- grid ordering: wider axis leads (v7x megacore); the streamed-abs path
    # needs seq outer / batch inner so the abs tile is reused across batches.
    seq_major = (not add_absolute_emb) or abs_resident
    if seq_major and n_b > n_s:
        grid = (n_b, n_s)
        xmap = lambda b, s: (b, s, 0)
        seq_axis = 1
    else:
        grid = (n_s, n_b)
        xmap = lambda s, b: (b, s, 0)
        seq_axis = 0

    x_spec = pl.BlockSpec((TB, TS, D_pad), xmap)
    codes_spec = pl.BlockSpec((TB, TS, 1), xmap)
    table_spec = pl.BlockSpec((5, D_pad), lambda *_: (0, 0))
    out_spec = pl.BlockSpec((TB, TS, D_pad), xmap)

    cparams = pltpu.CompilerParams(
        dimension_semantics=("parallel", "parallel"),
        vmem_limit_bytes=int(vmem_limit))
    io_alias = {1: 0} if donate_x else {}  # x is input #1 in every variant

    out_shape = jax.ShapeDtypeStruct((B, S_pad, D_pad), x.dtype)

    if add_absolute_emb:
        abs_s = absolute_emb[:S, :].astype(x.dtype)
        if S_pad != S or D_pad != D:
            abs_s = jnp.pad(abs_s, ((0, S_pad - S), (0, D_pad - D)))
        if abs_resident:
            abs_spec = pl.BlockSpec((S_pad, D_pad), lambda *_: (0, 0))
            kernel = functools.partial(_kernel_abs_resident,
                                       seq_axis=seq_axis, ts=TS)
        else:
            # seq is the outer grid axis here (seq_major is False only when
            # add_absolute_emb and not abs_resident never forces batch-major).
            abs_spec = pl.BlockSpec((TS, D_pad), lambda s, b: (s, 0))
            kernel = _kernel_abs_streamed
        out = pl.pallas_call(
            kernel,
            out_shape=out_shape,
            grid=grid,
            in_specs=[codes_spec, x_spec, table_spec, abs_spec],
            out_specs=out_spec,
            compiler_params=cparams,
            input_output_aliases=io_alias,
        )(codes_s, x, table, abs_s)
    else:
        out = pl.pallas_call(
            _kernel_noabs,
            out_shape=out_shape,
            grid=grid,
            in_specs=[codes_spec, x_spec, table_spec],
            out_specs=out_spec,
            compiler_params=cparams,
            input_output_aliases=io_alias,
        )(codes_s, x, table)

    if S_pad != S or D_pad != D:
        out = out[:, :S, :D]
    return out


# ----------------------------------------------------------------------------
# Deterministic parameter init (mirrors nn.Embedding(5, D) + Parameter(max_len, D),
# both trunc_normal_(std=0.02); PyTorch applies trunc_normal_ AFTER the
# padding_idx zeroing, so row 0 is also trunc-normal — reproduced here).
# ----------------------------------------------------------------------------
def init_params(key, emb_dim, max_len):
    k1, k2 = jax.random.split(key)
    std = 0.02
    structural = std * jax.random.truncated_normal(k1, -2.0, 2.0, (5, emb_dim), jnp.float32)
    absolute = std * jax.random.truncated_normal(k2, -2.0, 2.0, (max_len, emb_dim), jnp.float32)
    return structural, absolute


if __name__ == "__main__":
    # Small shapes: batch=2, seq_len=8, emb_dim=128 (lane-dense), max_len=64.
    B, S, D, MAX_LEN = 2, 8, 128, 64

    key = jax.random.PRNGKey(0)
    kx, kp = jax.random.split(key)
    x = jax.random.normal(kx, (B, S, D), jnp.float32)

    structural_table, absolute_emb = init_params(kp, D, MAX_LEN)

    # Synthetic seq_graphs (ragged; padded with code 0 like pad_sequence).
    seq_graph = [
        ["e1", "e2", "e3", "stop_entity", "h", "r", "t", "h", "r"],
        ["a", "b", "stop_entity", "h", "r", "t"],
    ]
    codes = get_codes(seq_graph, pad_to=S)  # (B, L >= S) int32

    # with absolute embedding
    out = pos_emb_code_sep(x, codes, structural_table, absolute_emb,
                           add_absolute_emb=True)
    out = jax.block_until_ready(out)
    ref = x + structural_table[codes[:, :S]] + absolute_emb[:S][None, :, :]
    assert out.shape == (B, S, D)
    np.testing.assert_allclose(np.asarray(out), np.asarray(ref), rtol=1e-6, atol=1e-6)

    # without absolute embedding (specialized kernel, no dead abs traffic)
    out2 = pos_emb_code_sep(x, codes, structural_table, add_absolute_emb=False)
    out2 = jax.block_until_ready(out2)
    ref2 = x + structural_table[codes[:, :S]]
    np.testing.assert_allclose(np.asarray(out2), np.asarray(ref2), rtol=1e-6, atol=1e-6)

    print("KERNEL_OK")
</pallas_src>

<mosaic_0001>
module attributes {stable_mosaic.version = 11 : i64} {
  func.func @_kernel_abs_resident(%arg0: i32, %arg1: i32, %arg2: memref<2x8x1xi32, #tpu.memory_space<vmem>>, %arg3: memref<2x8x128xf32, #tpu.memory_space<vmem>>, %arg4: memref<5x128xf32, #tpu.memory_space<vmem>>, %arg5: memref<8x128xf32, #tpu.memory_space<vmem>>, %arg6: memref<2x8x128xf32, #tpu.memory_space<vmem>>) attributes {dimension_semantics = [#tpu.dimension_semantics<parallel>, #tpu.dimension_semantics<parallel>], iteration_bounds = array<i64: 1, 1>, scalar_prefetch = 0 : i64, scratch_operands = 0 : i64, tpu.core_type = #tpu.core_type<tc>, window_params = [{transform_indices = @transform_0, window_bounds = array<i64: 2, 8, 1>}, {transform_indices = @transform_1, window_bounds = array<i64: 2, 8, 128>}, {pipeline_mode = #tpu.pipeline_mode<synchronous>, transform_indices = @transform_2, window_bounds = array<i64: 5, 128>}, {pipeline_mode = #tpu.pipeline_mode<synchronous>, transform_indices = @transform_3, window_bounds = array<i64: 8, 128>}, {transform_indices = @transform_4, window_bounds = array<i64: 2, 8, 128>}]} {
    %c0 = arith.constant 0 : index
    %c0_0 = arith.constant 0 : index
    %c0_1 = arith.constant 0 : index
    %0 = vector.load %arg2[%c0, %c0_0, %c0_1] : memref<2x8x1xi32, #tpu.memory_space<vmem>>, vector<2x8x1xi32>
    %c0_2 = arith.constant 0 : index
    %c0_3 = arith.constant 0 : index
    %c0_4 = arith.constant 0 : index
    %1 = vector.load %arg3[%c0_2, %c0_3, %c0_4] : memref<2x8x128xf32, #tpu.memory_space<vmem>>, vector<2x8x128xf32>
    %c1_i32 = arith.constant 1 : i32
    %2 = vector.broadcast %c1_i32 : i32 to vector<2x8x1xi32>
    %3 = arith.cmpi eq, %0, %2 : vector<2x8x1xi32>
    %c1 = arith.constant 1 : index
    %c0_5 = arith.constant 0 : index
    %4 = vector.load %arg4[%c1, %c0_5] : memref<5x128xf32, #tpu.memory_space<vmem>>, vector<1x128xf32>
    %c0_6 = arith.constant 0 : index
    %c0_7 = arith.constant 0 : index
    %5 = vector.load %arg4[%c0_6, %c0_7] : memref<5x128xf32, #tpu.memory_space<vmem>>, vector<1x128xf32>
    %6 = vector.shape_cast %3 : vector<2x8x1xi1> to vector<2x8x1xi1>
    %7 = vector.broadcast %6 : vector<2x8x1xi1> to vector<2x8x128xi1>
    %8 = vector.shape_cast %4 : vector<1x128xf32> to vector<1x1x128xf32>
    %9 = vector.broadcast %8 : vector<1x1x128xf32> to vector<2x8x128xf32>
    %10 = vector.shape_cast %5 : vector<1x128xf32> to vector<1x1x128xf32>
    %11 = vector.broadcast %10 : vector<1x1x128xf32> to vector<2x8x128xf32>
    %12 = arith.select %7, %9, %11 : vector<2x8x128xi1>, vector<2x8x128xf32>
    %c2_i32 = arith.constant 2 : i32
    %13 = vector.broadcast %c2_i32 : i32 to vector<2x8x1xi32>
    %14 = arith.cmpi eq, %0, %13 : vector<2x8x1xi32>
    %c2 = arith.constant 2 : index
    %c0_8 = arith.constant 0 : index
    %15 = vector.load %arg4[%c2, %c0_8] : memref<5x128xf32, #tpu.memory_space<vmem>>, vector<1x128xf32>
    %16 = vector.shape_cast %14 : vector<2x8x1xi1> to vector<2x8x1xi1>
    %17 = vector.broadcast %16 : vector<2x8x1xi1> to vector<2x8x128xi1>
    %18 = vector.shape_cast %15 : vector<1x128xf32> to vector<1x1x128xf32>
    %19 = vector.broadcast %18 : vector<1x1x128xf32> to vector<2x8x128xf32>
    %20 = arith.select %17, %19, %12 : vector<2x8x128xi1>, vector<2x8x128xf32>
    %c3_i32 = arith.constant 3 : i32
    %21 = vector.broadcast %c3_i32 : i32 to vector<2x8x1xi32>
    %22 = arith.cmpi eq, %0, %21 : vector<2x8x1xi32>
    %c3 = arith.constant 3 : index
    %c0_9 = arith.constant 0 : index
    %23 = vector.load %arg4[%c3, %c0_9] : memref<5x128xf32, #tpu.memory_space<vmem>>, vector<1x128xf32>
    %24 = vector.shape_cast %22 : vector<2x8x1xi1> to vector<2x8x1xi1>
    %25 = vector.broadcast %24 : vector<2x8x1xi1> to vector<2x8x128xi1>
    %26 = vector.shape_cast %23 : vector<1x128xf32> to vector<1x1x128xf32>
    %27 = vector.broadcast %26 : vector<1x1x128xf32> to vector<2x8x128xf32>
    %28 = arith.select %25, %27, %20 : vector<2x8x128xi1>, vector<2x8x128xf32>
    %c4_i32 = arith.constant 4 : i32
    %29 = vector.broadcast %c4_i32 : i32 to vector<2x8x1xi32>
    %30 = arith.cmpi eq, %0, %29 : vector<2x8x1xi32>
    %c4 = arith.constant 4 : index
    %c0_10 = arith.constant 0 : index
    %31 = vector.load %arg4[%c4, %c0_10] : memref<5x128xf32, #tpu.memory_space<vmem>>, vector<1x128xf32>
    %32 = vector.shape_cast %30 : vector<2x8x1xi1> to vector<2x8x1xi1>
    %33 = vector.broadcast %32 : vector<2x8x1xi1> to vector<2x8x128xi1>
    %34 = vector.shape_cast %31 : vector<1x128xf32> to vector<1x1x128xf32>
    %35 = vector.broadcast %34 : vector<1x1x128xf32> to vector<2x8x128xf32>
    %36 = arith.select %33, %35, %28 : vector<2x8x128xi1>, vector<2x8x128xf32>
    %c8_i32 = arith.constant 8 : i32
    %37 = arith.muli %arg0, %c8_i32 : i32
    %38 = tpu.assume_multiple %37, 8 : i32
    %39 = arith.index_cast %38 : i32 to index
    %c0_11 = arith.constant 0 : index
    %40 = vector.load %arg5[%39, %c0_11] : memref<8x128xf32, #tpu.memory_space<vmem>>, vector<8x128xf32>
    %41 = arith.addf %1, %36 : vector<2x8x128xf32>
    %42 = vector.shape_cast %40 : vector<8x128xf32> to vector<1x8x128xf32>
    %43 = vector.broadcast %42 : vector<1x8x128xf32> to vector<2x8x128xf32>
    %44 = arith.addf %41, %43 : vector<2x8x128xf32>
    %c0_12 = arith.constant 0 : index
    %c0_13 = arith.constant 0 : index
    %c0_14 = arith.constant 0 : index
    %45 = vector.load %arg6[%c0_12, %c0_13, %c0_14] : memref<2x8x128xf32, #tpu.memory_space<vmem>>, vector<2x8x128xf32>
    tpu.vector_store %arg6[%c0_12, %c0_13, %c0_14], %44 {strides = array<i32>} : memref<2x8x128xf32, #tpu.memory_space<vmem>>, vector<2x8x128xf32>,
    return
  }
  func.func @transform_0(%arg0: i32, %arg1: i32) -> (i32, i32, i32) {
    %c0_i32 = arith.constant 0 : i32
    %c0_i32_0 = arith.constant 0 : i32
    return %arg1, %arg0, %c0_i32 : i32, i32, i32
  }
  func.func @transform_1(%arg0: i32, %arg1: i32) -> (i32, i32, i32) {
    %c0_i32 = arith.constant 0 : i32
    %c0_i32_0 = arith.constant 0 : i32
    return %arg1, %arg0, %c0_i32 : i32, i32, i32
  }
  func.func @transform_2(%arg0: i32, %arg1: i32) -> (i32, i32) {
    %c0_i32 = arith.constant 0 : i32
    %c0_i32_0 = arith.constant 0 : i32
    %c0_i32_1 = arith.constant 0 : i32
    return %c0_i32, %c0_i32_0 : i32, i32
  }
  func.func @transform_3(%arg0: i32, %arg1: i32) -> (i32, i32) {
    %c0_i32 = arith.constant 0 : i32
    %c0_i32_0 = arith.constant 0 : i32
    %c0_i32_1 = arith.constant 0 : i32
    return %c0_i32, %c0_i32_0 : i32, i32
  }
  func.func @transform_4(%arg0: i32, %arg1: i32) -> (i32, i32, i32) {
    %c0_i32 = arith.constant 0 : i32
    %c0_i32_0 = arith.constant 0 : i32
    return %arg1, %arg0, %c0_i32 : i32, i32, i32
  }
}

</mosaic_0001>

<bundles_post_ra>
// kernel: tpu_custom_call.1
= control target key start
LH: loop header
LB: loop body
LE: loop exit
PB: predicated region body
PF: predicated region fallthrough
CT: control target
= control target key end

     0   :  { %9 = vsyncpa [#allocation3], 0  ;;  %s282_s0 = inlined_call_operand.vmem [shape: s32[2,8,1], index: 0, kind: input, shape index: {}]   ;;  %s283_s1 = inlined_call_operand.vmem [shape: f32[2,8,128], index: 1, kind: input, shape index: {}]   ;;  %s284_s2 = inlined_call_operand.vmem [shape: f32[5,128], index: 2, kind: input, shape index: {}]   ;;  %s285_s3 = inlined_call_operand.hbm [shape: f32[8,128], index: 3, kind: input, shape index: {}]   ;;  %s286_s4 = inlined_call_operand.hbm [shape: f32[2,8,128], index: 4, kind: output, shape index: {}]  }
   0x1   :  { %10 = vsyncpa [#allocation4], 0  ;;  %s201_s15 = smov [#allocation2]   ;;  %s153_s19 = scalar_lea.hbm %s285_s3, 128 }
   0x2   :  { %s23_s16 = sshll.u32 %s201_s15, 4  ;;  %p154_p0 = scmp.ne.s32.totalorder %s285_s3, %s153_s19  ;;  %s24_s16 = int_to_ptr.vmem [resolvable:$true] %s23_s16 }
   0x3   :  { %p157_p1 = scmp.lt.u32.totalorder %s153_s19, %s285_s3 }
   0x5   :  { %p159_p2 = pnand %p157_p1, %p154_p0 }
   0x7   :  { %162 = shalt.err (!%p159_p2)
}
   0x8   :  { %s163_s24 = scalar_lea.vmem %s24_s16, 128  ;;  %p168_p4 = scmp.lt.s32.totalorder %s24_s16, %s24_s16 }
   0x9   :  { %p164_p3 = scmp.ne.s32.totalorder %s24_s16, %s163_s24  ;;  %p169_p5 = scmp.lt.s32.totalorder %s163_s24, %s163_s24 }
   0xb   :  { %p170_p6 = por %p169_p5, %p168_p4 }
   0xd   :  { %p171_p7 = pnand %p170_p6, %p164_p3 }
   0xf   :  { %174 = shalt.err (!%p171_p7)
}
  0x10   :  { %26 = dma.hbm_to_vmem [thread:$0]  %s285_s3, 128, %s24_s16, [#allocation3]  }
  0x11   :  { %197 = dma.done.wait [#allocation3], 128  }
  0x12   :  { %198 = vsyncadd [#allocation3], 4294967168  ;;  %v202_v0 = vmov 0   ;;  %v30_v1 = vld [vmem:[%s282_s0] sm:$0xff]  ;;  %v31_v2 = vld [vmem:[%s282_s0 + $0x8] sm:$0xff]  ;;  %s203_s17 = smov [#allocation5]  }
  0x13   :  { %152 = vset.pattern.permute.xlu1 %v202_v0  ;;  %151 = vset.pattern.permute.xlu0 %v202_v0  ;;  %vm58_vm0 = vcmp.eq.s32.totalorder %v30_v1, 2  ;;  %vm34_vm1 = vcmp.eq.s32.totalorder %v30_v1, 1  ;;  %vm59_vm2 = vcmp.eq.s32.totalorder %v31_v2, 2  ;;  %vm35_vm3 = vcmp.eq.s32.totalorder %v31_v2, 1  ;;  %v141_v15 = vld [vmem:[%s284_s2 + $0x1] ss:$0 sm:$0xff] }
  0x14   :  { %v61_v3 = vsel %vm58_vm0, 1, %v202_v0  ;;  %v38_v4 = vsel %vm34_vm1, 1, %v202_v0  ;;  %v62_v5 = vsel %vm59_vm2, 1, %v202_v0  ;;  %v39_v6 = vsel %vm35_vm3, 1, %v202_v0  ;;  %v142_v16 = vld [vmem:[%s284_s2] ss:$0 sm:$0xff] }
  0x15   :  { %64 = vperm.xlu1 %152, %v61_v3   ;;  %41 = vperm.xlu0 %151, %v38_v4   ;;  %vm78_vm4 = vcmp.eq.s32.totalorder %v31_v2, 3  ;;  %vm77_vm5 = vcmp.eq.s32.totalorder %v30_v1, 3  ;;  %vm97_vm6 = vcmp.eq.s32.totalorder %v31_v2, 4  ;;  %vm96_vm7 = vcmp.eq.s32.totalorder %v30_v1, 4  ;;  %v143_v21 = vld [vmem:[%s284_s2 + $0x2] ss:$0 sm:$0xff] }
  0x16   :  { %v81_v7 = vsel %vm78_vm4, 1, %v202_v0  ;;  %v80_v8 = vsel %vm77_vm5, 1, %v202_v0  ;;  %v100_v9 = vsel %vm97_vm6, 1, %v202_v0  ;;  %v99_v10 = vsel %vm96_vm7, 1, %v202_v0  ;;  %v144_v22 = vld [vmem:[%s284_s2 + $0x3] ss:$0 sm:$0xff] }
  0x17   :  { %v145_v23 = vld [vmem:[%s284_s2 + $0x4] ss:$0 sm:$0xff]  ;;  %v33_v26 = vld [vmem:[%s283_s1 + $0x8] sm:$0xff]  ;;  %s129_s18 = sshll.u32 %s203_s17, 4  ;;  %s130_s18 = int_to_ptr.vmem [resolvable:$true] %s129_s18 }
  0x18   :  { %v32_v28 = vld [vmem:[%s283_s1] sm:$0xff]  ;;  %v117_v32 = vld [vmem:[#allocation2] sm:$0xff]  ;;  %s175_s2 = scalar_lea.vmem %s130_s18, 256  ;;  %p180_p9 = scmp.lt.s32.totalorder %s130_s18, %s130_s18 }
  0x19   :  { %67 = vperm.xlu1 %152, %v62_v5   ;;  %44 = vperm.xlu0 %151, %v39_v6   ;;  %p176_p8 = scmp.ne.s32.totalorder %s130_s18, %s175_s2  ;;  %p181_p10 = scmp.lt.s32.totalorder %s175_s2, %s175_s2 }
  0x1b   :  { %p182_p11 = por %p181_p10, %p180_p9 }
  0x1d   :  { %86 = vperm.xlu1 %152, %v81_v7   ;;  %83 = vperm.xlu0 %151, %v80_v8   ;;  %p183_p12 = pnand %p182_p11, %p176_p8 }
  0x21   :  { %105 = vperm.xlu1 %152, %v100_v9   ;;  %102 = vperm.xlu0 %151, %v99_v10  }
  0x94   :  { %v65_v11 = vpop.permute.xlu1 %64  ;;  %v42_v12 = vpop.permute.xlu0 %41 }
  0x95   :  { %vm46_vm8 = vcmp.eq.s32.totalorder %v42_v12, 1  ;;  %vm69_vm10 = vcmp.eq.s32.totalorder %v65_v11, 1 }
  0x96   :  { %v56_v19 = vsel %vm46_vm8, %v141_v15, %v142_v16 }
  0x97   :  { %v75_v25 = vsel %vm69_vm10, %v143_v21, %v56_v19 }
  0x98   :  { %v68_v13 = vpop.permute.xlu1 %67  ;;  %v45_v14 = vpop.permute.xlu0 %44 }
  0x99   :  { %vm47_vm9 = vcmp.eq.s32.totalorder %v45_v14, 1  ;;  %vm70_vm11 = vcmp.eq.s32.totalorder %v68_v13, 1 }
  0x9a   :  { %v57_v20 = vsel %vm47_vm9, %v141_v15, %v142_v16 }
  0x9b   :  { %v76_v24 = vsel %vm70_vm11, %v143_v21, %v57_v20 }
  0x9c   :  { %v87_v17 = vpop.permute.xlu1 %86  ;;  %v84_v18 = vpop.permute.xlu0 %83 }
  0x9d   :  { %vm89_vm12 = vcmp.eq.s32.totalorder %v87_v17, 1  ;;  %vm88_vm13 = vcmp.eq.s32.totalorder %v84_v18, 1 }
  0x9e   :  { %v95_v30 = vsel %vm89_vm12, %v144_v22, %v76_v24  ;;  %v94_v31 = vsel %vm88_vm13, %v144_v22, %v75_v25 }
  0xa0   :  { %v106_v27 = vpop.permute.xlu1 %105  ;;  %v103_v29 = vpop.permute.xlu0 %102 }
  0xa1   :  { %vm108_vm14 = vcmp.eq.s32.totalorder %v106_v27, 1  ;;  %vm107_vm15 = vcmp.eq.s32.totalorder %v103_v29, 1 }
  0xa2   :  { %v114_v33 = vsel %vm108_vm14, %v145_v23, %v95_v30  ;;  %v113_v34 = vsel %vm107_vm15, %v145_v23, %v94_v31 }
  0xa3   :  { %v119_v35 = vadd.f32 %v114_v33, %v33_v26  ;;  %v118_v36 = vadd.f32 %v113_v34, %v32_v28 }
  0xa5   :  { %v121_v37 = vadd.f32 %v119_v35, %v117_v32  ;;  %v120_v38 = vadd.f32 %v118_v36, %v117_v32 }
  0xa7   :  { %123 = vst [vmem:[#allocation5 + $0x8] sm:$0xff] %v121_v37  ;;  %122 = vst [vmem:[#allocation5] sm:$0xff] %v120_v38 }
  0xa8   :  { %186 = shalt.err (!%p183_p12)
}
  0xa9   :  { %s187_s20 = scalar_lea.hbm %s286_s4, 256 }
  0xaa   :  { %p188_p13 = scmp.ne.s32.totalorder %s286_s4, %s187_s20  ;;  %p191_p0 = scmp.lt.u32.totalorder %s187_s20, %s286_s4 }
  0xac   :  { %p193_p1 = pnand %p191_p0, %p188_p13 }
  0xae   :  { %196 = shalt.err (!%p193_p1)
}
  0xaf   :  { %s204_s25 = smov 128   ;;  %s205_s26 = smov 8  }
  0xb0   :  { %135 = dma.vmem_to_hbm [thread:$0]  %s130_s18, 256, %s286_s4, [#allocation4], %s204_s25, %s204_s25, %s205_s26  }
  0xb1   :  { %199 = dma.done.wait [#allocation4], 256  }
  0xb2   :  { %200 = vsyncadd [#allocation4], 4294967040 }
  0xb3   :  { %139 = vsyncpa [#allocation3], 1 }
  0xb4   :  { %140 = vsyncpa [#allocation4], 1 }

</bundles_post_ra>
